<compile_context>
chip_gen: v7x
topology: tpu7x:2x2x1
jax: 0.10.0
libtpu: 0.0.40
codegen_flags: <defaults>
</compile_context>

<pallas_src>
import functools

import jax
import jax.numpy as jnp
from jax import lax
from jax.experimental import pallas as pl
from jax.experimental.pallas import tpu as pltpu


def _vmem_capacity_bytes() -> int:
    """Physical per-core VMEM; conservative fallback if the query fails."""
    try:
        info = pltpu.get_tpu_info()
        cap = getattr(info, "vmem_capacity_bytes", None)
        if cap:
            return int(cap)
    except Exception:
        pass
    return 64 * 1024 * 1024  # v7x per-core size: safe lower bound everywhere.


def _choose_tiles(B, T, itemsize, vmem_limit, block_rows=None, block_cols=None):
    """Pick (batch_tile, time_tile) against the per-generation VMEM budget."""
    # Per-element per-step footprint: 2 inputs x 2 pipeline buffers in the
    # native dtype, plus ~4 full-tile f32 temporaries (upcast/shifted copies).
    bytes_per_elem = 4 * itemsize + 16
    elem_budget = max(8 * 128, (vmem_limit * 7 // 10) // bytes_per_elem)

    # --- time-axis tile (multiple of 128, or the full extent) ---
    if block_cols is not None:
        bc = min(block_cols, T)
        tt = T if bc == T else max(128, (bc // 128) * 128)
    else:
        max_tt = max(128, min(elem_budget // 8, 16384) // 128 * 128)
        tt = T if T <= max_tt else max_tt

    # --- batch-axis tile (multiple of 8, or the full extent) ---
    if B <= 8:
        tb = B
    elif block_rows is not None:
        br = min(block_rows, B)
        tb = B if br == B else max(8, (br // 8) * 8)
    else:
        max_tb = max(8, min(elem_budget // max(tt, 1), 2048) // 8 * 8)
        tb = min(max_tb, (B // 8) * 8)
        if B >= 16:
            # Keep >= 2 batch tiles so both v7x TensorCores get work.
            tb = min(tb, max(8, (((B + 1) // 2) // 8) * 8))
    return tb, tt


def _negpearson_kernel(p_ref, l_ref, out_ref, acc_ref, *,
                       total_rows, total_cols, ragged_rows, ragged_cols):
    """Grid = (batch tiles, time tiles); accumulates per-row raw moments.

    acc_ref columns: 0 sum(dp), 1 sum(dl), 2 sum(dp^2), 3 sum(dl^2),
                     4 sum(dp*dl), 5 pivot_p, 6 pivot_l   (dp = p - pivot_p).
    """
    bi = pl.program_id(0)
    ki = pl.program_id(1)
    n_k = pl.num_programs(1)
    tb, tt = p_ref.shape

    @pl.when(ki == 0)
    def _init():
        acc_ref[...] = jnp.zeros_like(acc_ref)
        # Per-row pivot = first sample. Correlation is shift-invariant, and
        # pivot-shifting keeps one-pass moments well conditioned when the
        # row mean is large relative to its standard deviation.
        acc_ref[:, 5:6] = p_ref[:, 0:1].astype(jnp.float32)
        acc_ref[:, 6:7] = l_ref[:, 0:1].astype(jnp.float32)

    # Native-dtype tile -> f32 on the VPU, shifted by the per-row pivot.
    dp = p_ref[...].astype(jnp.float32) - acc_ref[:, 5:6]
    dl = l_ref[...].astype(jnp.float32) - acc_ref[:, 6:7]
    if ragged_cols:
        # Mask padded columns of the last (ragged) time tile. jnp.where is a
        # select, so garbage/NaN in the padded region cannot leak into sums.
        col_ids = ki * tt + lax.broadcasted_iota(jnp.int32, (tb, tt), 1)
        valid = col_ids < total_cols
        dp = jnp.where(valid, dp, 0.0)
        dl = jnp.where(valid, dl, 0.0)

    acc_ref[:, 0:1] += jnp.sum(dp, axis=1, keepdims=True)
    acc_ref[:, 1:2] += jnp.sum(dl, axis=1, keepdims=True)
    acc_ref[:, 2:3] += jnp.sum(dp * dp, axis=1, keepdims=True)
    acc_ref[:, 3:4] += jnp.sum(dl * dl, axis=1, keepdims=True)
    acc_ref[:, 4:5] += jnp.sum(dp * dl, axis=1, keepdims=True)

    @pl.when(ki == n_k - 1)
    def _finalize():
        n = jnp.float32(total_cols)
        sp, sl = acc_ref[:, 0:1], acc_ref[:, 1:2]
        spp, sll, spl = acc_ref[:, 2:3], acc_ref[:, 3:4], acc_ref[:, 4:5]
        cov = n * spl - sp * sl
        var_p = n * spp - sp * sp
        var_l = n * sll - sl * sl
        # torch.corrcoef's 1/(N-1) factors cancel in this ratio.
        corr = cov * lax.rsqrt(var_p * var_l)          # (tb, 1)
        contrib = 1.0 - corr
        if ragged_rows:
            row_ids = bi * tb + lax.broadcasted_iota(jnp.int32, (tb, 1), 0)
            contrib = jnp.where(row_ids < total_rows, contrib, 0.0)
        # Lane-dense (1, 8, 128) output block filled with this tile's partial.
        out_ref[...] = jnp.full(out_ref.shape, jnp.sum(contrib),
                                dtype=out_ref.dtype)


def neg_pearson_loss(preds: jax.Array, labels: jax.Array, *,
                     block_rows: int | None = None,
                     block_cols: int | None = None) -> jax.Array:
    """Pallas implementation of NegPearson.forward for (B, T) signals."""
    assert preds.shape == labels.shape and preds.ndim == 2
    B, T = preds.shape
    itemsize = max(jnp.dtype(preds.dtype).itemsize,
                   jnp.dtype(labels.dtype).itemsize)

    vmem_cap = _vmem_capacity_bytes()
    vmem_limit = min(vmem_cap * 3 // 4, 128 * 1024 * 1024)

    tb, tt = _choose_tiles(B, T, itemsize, vmem_limit, block_rows, block_cols)
    n_b = pl.cdiv(B, tb)
    n_k = pl.cdiv(T, tt)

    kernel = functools.partial(
        _negpearson_kernel,
        total_rows=B, total_cols=T,
        ragged_rows=(B % tb != 0),
        ragged_cols=(T % tt != 0),
    )

    partials = pl.pallas_call(
        kernel,
        out_shape=jax.ShapeDtypeStruct((n_b, 8, 128), jnp.float32),
        grid=(n_b, n_k),
        in_specs=[
            pl.BlockSpec((tb, tt), lambda i, k: (i, k)),
            pl.BlockSpec((tb, tt), lambda i, k: (i, k)),
        ],
        out_specs=pl.BlockSpec((1, 8, 128), lambda i, k: (i, 0, 0)),
        scratch_shapes=[pltpu.VMEM((tb, 8), jnp.float32)],
        compiler_params=pltpu.CompilerParams(
            dimension_semantics=("parallel", "arbitrary"),
            vmem_limit_bytes=int(vmem_limit),
        ),
    )(preds, labels)

    # Tiny final reduction over per-tile partial sums in the wrapper.
    return jnp.sum(partials[:, 0, 0]) / B


def _reference_neg_pearson(preds, labels):
    # Pure-JAX reference mirroring the PyTorch loop, for sanity checking.
    def per_row(p, l):
        p = p.astype(jnp.float32)
        l = l.astype(jnp.float32)
        dp = p - jnp.mean(p)
        dl = l - jnp.mean(l)
        corr = jnp.sum(dp * dl) / jnp.sqrt(jnp.sum(dp * dp) * jnp.sum(dl * dl))
        return 1.0 - corr

    return jnp.mean(jax.vmap(per_row)(preds, labels))


if __name__ == "__main__":
    key = jax.random.PRNGKey(0)
    k1, k2, k3, k4, k5, k6 = jax.random.split(key, 6)

    # Case 1: tiny batch of short signals (typical use), default tiling.
    B1, T1 = 2, 128
    p1 = jax.random.normal(k1, (B1, T1), dtype=jnp.float32)
    l1 = 0.7 * p1 + 0.3 * jax.random.normal(k2, (B1, T1), dtype=jnp.float32) + 1.5
    out1 = jax.block_until_ready(neg_pearson_loss(p1, l1))
    ref1 = jax.block_until_ready(_reference_neg_pearson(p1, l1))
    assert jnp.allclose(out1, ref1, atol=2e-5, rtol=2e-5), (out1, ref1)

    # Case 2: default tiling with >= 2 batch tiles (megacore-style split).
    B2, T2 = 16, 512
    p2 = jax.random.normal(k3, (B2, T2), dtype=jnp.float32)
    l2 = 0.5 * p2 + 0.5 * jax.random.normal(k4, (B2, T2), dtype=jnp.float32) - 0.3
    out2 = jax.block_until_ready(neg_pearson_loss(p2, l2))
    ref2 = jax.block_until_ready(_reference_neg_pearson(p2, l2))
    assert jnp.allclose(out2, ref2, atol=2e-5, rtol=2e-5), (out2, ref2)

    # Case 3: forced small tiles -> ragged batch tile, ragged time tile, and
    # multi-step time-axis moment accumulation.
    B3, T3 = 20, 384
    p3 = jax.random.normal(k5, (B3, T3), dtype=jnp.float32)
    l3 = 0.6 * p3 + 0.4 * jax.random.normal(k6, (B3, T3), dtype=jnp.float32) + 0.8
    out3 = jax.block_until_ready(
        neg_pearson_loss(p3, l3, block_rows=8, block_cols=256))
    ref3 = jax.block_until_ready(_reference_neg_pearson(p3, l3))
    assert jnp.allclose(out3, ref3, atol=2e-5, rtol=2e-5), (out3, ref3)

    print("KERNEL_OK")
</pallas_src>

<mosaic_0001>
module attributes {stable_mosaic.version = 11 : i64} {
  func.func @_negpearson_kernel(%arg0: i32, %arg1: i32, %arg2: memref<2x128xf32, #tpu.memory_space<vmem>>, %arg3: memref<2x128xf32, #tpu.memory_space<vmem>>, %arg4: memref<1x8x128xf32, #tpu.memory_space<vmem>>, %arg5: memref<2x8xf32, #tpu.memory_space<vmem>>) attributes {dimension_semantics = [#tpu.dimension_semantics<parallel>, #tpu.dimension_semantics<arbitrary>], iteration_bounds = array<i64: 1, 1>, scalar_prefetch = 0 : i64, scratch_operands = 1 : i64, tpu.core_type = #tpu.core_type<tc>, window_params = [{transform_indices = @transform_0, window_bounds = array<i64: 2, 128>}, {transform_indices = @transform_1, window_bounds = array<i64: 2, 128>}, {transform_indices = @transform_2, window_bounds = array<i64: 1, 8, 128>}]} {
    %c0_i32 = arith.constant 0 : i32
    %0 = arith.cmpi eq, %arg1, %c0_i32 : i32
    %1 = arith.extui %0 : i1 to i32
    %c0_i32_0 = arith.constant 0 : i32
    %2 = arith.cmpi ne, %1, %c0_i32_0 : i32
    scf.if %2 {
      %cst_28 = arith.constant 0.000000e+00 : f32
      %42 = vector.broadcast %cst_28 : f32 to vector<2x8xf32>
      %c0_29 = arith.constant 0 : index
      %c0_30 = arith.constant 0 : index
      %43 = vector.load %arg5[%c0_29, %c0_30] : memref<2x8xf32, #tpu.memory_space<vmem>>, vector<2x8xf32>
      tpu.vector_store %arg5[%c0_29, %c0_30], %42 {strides = array<i32>} : memref<2x8xf32, #tpu.memory_space<vmem>>, vector<2x8xf32>,
      %c0_31 = arith.constant 0 : index
      %c0_32 = arith.constant 0 : index
      %44 = vector.load %arg2[%c0_31, %c0_32] : memref<2x128xf32, #tpu.memory_space<vmem>>, vector<2x1xf32>
      %c0_33 = arith.constant 0 : index
      %c5_34 = arith.constant 5 : index
      %45 = vector.load %arg5[%c0_33, %c5_34] : memref<2x8xf32, #tpu.memory_space<vmem>>, vector<2x1xf32>
      tpu.vector_store %arg5[%c0_33, %c5_34], %44 {strides = array<i32>} : memref<2x8xf32, #tpu.memory_space<vmem>>, vector<2x1xf32>,
      %c0_35 = arith.constant 0 : index
      %c0_36 = arith.constant 0 : index
      %46 = vector.load %arg3[%c0_35, %c0_36] : memref<2x128xf32, #tpu.memory_space<vmem>>, vector<2x1xf32>
      %c0_37 = arith.constant 0 : index
      %c6_38 = arith.constant 6 : index
      %47 = vector.load %arg5[%c0_37, %c6_38] : memref<2x8xf32, #tpu.memory_space<vmem>>, vector<2x1xf32>
      tpu.vector_store %arg5[%c0_37, %c6_38], %46 {strides = array<i32>} : memref<2x8xf32, #tpu.memory_space<vmem>>, vector<2x1xf32>,
    } else {
    }
    %c0 = arith.constant 0 : index
    %c0_1 = arith.constant 0 : index
    %3 = vector.load %arg2[%c0, %c0_1] : memref<2x128xf32, #tpu.memory_space<vmem>>, vector<2x128xf32>
    %c0_2 = arith.constant 0 : index
    %c5 = arith.constant 5 : index
    %4 = vector.load %arg5[%c0_2, %c5] : memref<2x8xf32, #tpu.memory_space<vmem>>, vector<2x1xf32>
    %5 = vector.broadcast %4 : vector<2x1xf32> to vector<2x128xf32>
    %6 = arith.subf %3, %5 : vector<2x128xf32>
    %c0_3 = arith.constant 0 : index
    %c0_4 = arith.constant 0 : index
    %7 = vector.load %arg3[%c0_3, %c0_4] : memref<2x128xf32, #tpu.memory_space<vmem>>, vector<2x128xf32>
    %c0_5 = arith.constant 0 : index
    %c6 = arith.constant 6 : index
    %8 = vector.load %arg5[%c0_5, %c6] : memref<2x8xf32, #tpu.memory_space<vmem>>, vector<2x1xf32>
    %9 = vector.broadcast %8 : vector<2x1xf32> to vector<2x128xf32>
    %10 = arith.subf %7, %9 : vector<2x128xf32>
    %c0_6 = arith.constant 0 : index
    %c0_7 = arith.constant 0 : index
    %11 = vector.load %arg5[%c0_6, %c0_7] : memref<2x8xf32, #tpu.memory_space<vmem>>, vector<2x1xf32>
    %cst = arith.constant dense<0.000000e+00> : vector<2xf32>
    %12 = vector.multi_reduction <add>, %6, %cst [1] : vector<2x128xf32> to vector<2xf32>
    %13 = vector.shape_cast %12 : vector<2xf32> to vector<2x1xf32>
    %14 = arith.addf %11, %13 : vector<2x1xf32>
    %c0_8 = arith.constant 0 : index
    %c0_9 = arith.constant 0 : index
    %15 = vector.load %arg5[%c0_8, %c0_9] : memref<2x8xf32, #tpu.memory_space<vmem>>, vector<2x1xf32>
    tpu.vector_store %arg5[%c0_8, %c0_9], %14 {strides = array<i32>} : memref<2x8xf32, #tpu.memory_space<vmem>>, vector<2x1xf32>,
    %c0_10 = arith.constant 0 : index
    %c1 = arith.constant 1 : index
    %16 = vector.load %arg5[%c0_10, %c1] : memref<2x8xf32, #tpu.memory_space<vmem>>, vector<2x1xf32>
    %cst_11 = arith.constant dense<0.000000e+00> : vector<2xf32>
    %17 = vector.multi_reduction <add>, %10, %cst_11 [1] : vector<2x128xf32> to vector<2xf32>
    %18 = vector.shape_cast %17 : vector<2xf32> to vector<2x1xf32>
    %19 = arith.addf %16, %18 : vector<2x1xf32>
    %c0_12 = arith.constant 0 : index
    %c1_13 = arith.constant 1 : index
    %20 = vector.load %arg5[%c0_12, %c1_13] : memref<2x8xf32, #tpu.memory_space<vmem>>, vector<2x1xf32>
    tpu.vector_store %arg5[%c0_12, %c1_13], %19 {strides = array<i32>} : memref<2x8xf32, #tpu.memory_space<vmem>>, vector<2x1xf32>,
    %c0_14 = arith.constant 0 : index
    %c2 = arith.constant 2 : index
    %21 = vector.load %arg5[%c0_14, %c2] : memref<2x8xf32, #tpu.memory_space<vmem>>, vector<2x1xf32>
    %22 = arith.mulf %6, %6 : vector<2x128xf32>
    %cst_15 = arith.constant dense<0.000000e+00> : vector<2xf32>
    %23 = vector.multi_reduction <add>, %22, %cst_15 [1] : vector<2x128xf32> to vector<2xf32>
    %24 = vector.shape_cast %23 : vector<2xf32> to vector<2x1xf32>
    %25 = arith.addf %21, %24 : vector<2x1xf32>
    %c0_16 = arith.constant 0 : index
    %c2_17 = arith.constant 2 : index
    %26 = vector.load %arg5[%c0_16, %c2_17] : memref<2x8xf32, #tpu.memory_space<vmem>>, vector<2x1xf32>
    tpu.vector_store %arg5[%c0_16, %c2_17], %25 {strides = array<i32>} : memref<2x8xf32, #tpu.memory_space<vmem>>, vector<2x1xf32>,
    %c0_18 = arith.constant 0 : index
    %c3 = arith.constant 3 : index
    %27 = vector.load %arg5[%c0_18, %c3] : memref<2x8xf32, #tpu.memory_space<vmem>>, vector<2x1xf32>
    %28 = arith.mulf %10, %10 : vector<2x128xf32>
    %cst_19 = arith.constant dense<0.000000e+00> : vector<2xf32>
    %29 = vector.multi_reduction <add>, %28, %cst_19 [1] : vector<2x128xf32> to vector<2xf32>
    %30 = vector.shape_cast %29 : vector<2xf32> to vector<2x1xf32>
    %31 = arith.addf %27, %30 : vector<2x1xf32>
    %c0_20 = arith.constant 0 : index
    %c3_21 = arith.constant 3 : index
    %32 = vector.load %arg5[%c0_20, %c3_21] : memref<2x8xf32, #tpu.memory_space<vmem>>, vector<2x1xf32>
    tpu.vector_store %arg5[%c0_20, %c3_21], %31 {strides = array<i32>} : memref<2x8xf32, #tpu.memory_space<vmem>>, vector<2x1xf32>,
    %c0_22 = arith.constant 0 : index
    %c4 = arith.constant 4 : index
    %33 = vector.load %arg5[%c0_22, %c4] : memref<2x8xf32, #tpu.memory_space<vmem>>, vector<2x1xf32>
    %34 = arith.mulf %6, %10 : vector<2x128xf32>
    %cst_23 = arith.constant dense<0.000000e+00> : vector<2xf32>
    %35 = vector.multi_reduction <add>, %34, %cst_23 [1] : vector<2x128xf32> to vector<2xf32>
    %36 = vector.shape_cast %35 : vector<2xf32> to vector<2x1xf32>
    %37 = arith.addf %33, %36 : vector<2x1xf32>
    %c0_24 = arith.constant 0 : index
    %c4_25 = arith.constant 4 : index
    %38 = vector.load %arg5[%c0_24, %c4_25] : memref<2x8xf32, #tpu.memory_space<vmem>>, vector<2x1xf32>
    tpu.vector_store %arg5[%c0_24, %c4_25], %37 {strides = array<i32>} : memref<2x8xf32, #tpu.memory_space<vmem>>, vector<2x1xf32>,
    %c0_i32_26 = arith.constant 0 : i32
    %39 = arith.cmpi eq, %arg1, %c0_i32_26 : i32
    %40 = arith.extui %39 : i1 to i32
    %c0_i32_27 = arith.constant 0 : i32
    %41 = arith.cmpi ne, %40, %c0_i32_27 : i32
    scf.if %41 {
      %c0_28 = arith.constant 0 : index
      %c0_29 = arith.constant 0 : index
      %42 = vector.load %arg5[%c0_28, %c0_29] : memref<2x8xf32, #tpu.memory_space<vmem>>, vector<2x1xf32>
      %c0_30 = arith.constant 0 : index
      %c1_31 = arith.constant 1 : index
      %43 = vector.load %arg5[%c0_30, %c1_31] : memref<2x8xf32, #tpu.memory_space<vmem>>, vector<2x1xf32>
      %c0_32 = arith.constant 0 : index
      %c2_33 = arith.constant 2 : index
      %44 = vector.load %arg5[%c0_32, %c2_33] : memref<2x8xf32, #tpu.memory_space<vmem>>, vector<2x1xf32>
      %c0_34 = arith.constant 0 : index
      %c3_35 = arith.constant 3 : index
      %45 = vector.load %arg5[%c0_34, %c3_35] : memref<2x8xf32, #tpu.memory_space<vmem>>, vector<2x1xf32>
      %c0_36 = arith.constant 0 : index
      %c4_37 = arith.constant 4 : index
      %46 = vector.load %arg5[%c0_36, %c4_37] : memref<2x8xf32, #tpu.memory_space<vmem>>, vector<2x1xf32>
      %cst_38 = arith.constant 1.280000e+02 : f32
      %47 = vector.broadcast %cst_38 : f32 to vector<2x1xf32>
      %48 = arith.mulf %47, %46 : vector<2x1xf32>
      %49 = arith.mulf %42, %43 : vector<2x1xf32>
      %50 = arith.subf %48, %49 : vector<2x1xf32>
      %cst_39 = arith.constant 1.280000e+02 : f32
      %51 = vector.broadcast %cst_39 : f32 to vector<2x1xf32>
      %52 = arith.mulf %51, %44 : vector<2x1xf32>
      %53 = arith.mulf %42, %42 : vector<2x1xf32>
      %54 = arith.subf %52, %53 : vector<2x1xf32>
      %cst_40 = arith.constant 1.280000e+02 : f32
      %55 = vector.broadcast %cst_40 : f32 to vector<2x1xf32>
      %56 = arith.mulf %55, %45 : vector<2x1xf32>
      %57 = arith.mulf %43, %43 : vector<2x1xf32>
      %58 = arith.subf %56, %57 : vector<2x1xf32>
      %59 = arith.mulf %54, %58 : vector<2x1xf32>
      %60 = math.rsqrt %59 : vector<2x1xf32>
      %61 = arith.mulf %50, %60 : vector<2x1xf32>
      %cst_41 = arith.constant 1.000000e+00 : f32
      %62 = vector.broadcast %cst_41 : f32 to vector<2x1xf32>
      %63 = arith.subf %62, %61 : vector<2x1xf32>
      %64 = vector.shape_cast %63 : vector<2x1xf32> to vector<1x2x1xf32>
      %cst_42 = arith.constant dense<0.000000e+00> : vector<1xf32>
      %65 = vector.multi_reduction <add>, %64, %cst_42 [1, 2] : vector<1x2x1xf32> to vector<1xf32>
      %66 = vector.shape_cast %65 : vector<1xf32> to vector<1x1x1xf32>
      %67 = vector.extract %66[0, 0, 0] : f32 from vector<1x1x1xf32>
      %68 = vector.broadcast %67 : f32 to vector<1x8x128xf32>
      %c0_43 = arith.constant 0 : index
      %c0_44 = arith.constant 0 : index
      %c0_45 = arith.constant 0 : index
      %69 = vector.load %arg4[%c0_43, %c0_44, %c0_45] : memref<1x8x128xf32, #tpu.memory_space<vmem>>, vector<1x8x128xf32>
      tpu.vector_store %arg4[%c0_43, %c0_44, %c0_45], %68 {strides = array<i32>} : memref<1x8x128xf32, #tpu.memory_space<vmem>>, vector<1x8x128xf32>,
    } else {
    }
    return
  }
  func.func @transform_0(%arg0: i32, %arg1: i32) -> (i32, i32) {
    %c0_i32 = arith.constant 0 : i32
    return %arg0, %arg1 : i32, i32
  }
  func.func @transform_1(%arg0: i32, %arg1: i32) -> (i32, i32) {
    %c0_i32 = arith.constant 0 : i32
    return %arg0, %arg1 : i32, i32
  }
  func.func @transform_2(%arg0: i32, %arg1: i32) -> (i32, i32, i32) {
    %c0_i32 = arith.constant 0 : i32
    %c0_i32_0 = arith.constant 0 : i32
    %c0_i32_1 = arith.constant 0 : i32
    return %arg0, %c0_i32, %c0_i32_0 : i32, i32, i32
  }
}

</mosaic_0001>

<bundles_post_ra>
// kernel: tpu_custom_call.1
= control target key start
LH: loop header
LB: loop body
LE: loop exit
PB: predicated region body
PF: predicated region fallthrough
CT: control target
= control target key end

     0   :  { %7 = vsyncpa [#allocation4], 0  ;;  %s289_s0 = inlined_call_operand.hbm [shape: f32[2,128], index: 0, kind: input, shape index: {}]   ;;  %s290_s1 = inlined_call_operand.vmem [shape: f32[2,128], index: 1, kind: input, shape index: {}]   ;;  %s291_s2 = inlined_call_operand.hbm [shape: f32[1,8,128], index: 2, kind: output, shape index: {}]  }
   0x1   :  { %8 = vsyncpa [#allocation5], 0  ;;  %s226_s9 = smov [#allocation3]   ;;  %s178_s13 = scalar_lea.hbm %s289_s0, 32 }
   0x2   :  { %s15_s10 = sshll.u32 %s226_s9, 4  ;;  %p179_p0 = scmp.ne.s32.totalorder %s289_s0, %s178_s13  ;;  %s16_s10 = int_to_ptr.vmem [resolvable:$true] %s15_s10 }
   0x3   :  { %p182_p1 = scmp.lt.u32.totalorder %s178_s13, %s289_s0 }
   0x5   :  { %p184_p2 = pnand %p182_p1, %p179_p0 }
   0x7   :  { %187 = shalt.err (!%p184_p2)
}
   0x8   :  { %s188_s18 = scalar_lea.vmem %s16_s10, 32  ;;  %p193_p4 = scmp.lt.s32.totalorder %s16_s10, %s16_s10 }
   0x9   :  { %p189_p3 = scmp.ne.s32.totalorder %s16_s10, %s188_s18  ;;  %p194_p5 = scmp.lt.s32.totalorder %s188_s18, %s188_s18 }
   0xb   :  { %p195_p6 = por %p194_p5, %p193_p4 }
   0xd   :  { %p196_p7 = pnand %p195_p6, %p189_p3 }
   0xf   :  { %199 = shalt.err (!%p196_p7)
}
  0x10   :  { %18 = dma.hbm_to_vmem [thread:$0]  %s289_s0, 32, %s16_s10, [#allocation4]  }
  0x11   :  { %222 = dma.done.wait [#allocation4], 32  }
  0x12   :  { %223 = vsyncadd [#allocation4], 4294967264  ;;  %vm28_vm0 = vcmask 58368   ;;  %v227_v0 = vmov 0.0   ;;  %v228_v1 = vmov 5   ;;  %s229_s21 = smov 5  }
  0x13   :  { %29 = vst.msk [vmem:[#allocation2] sm:$0x3] %vm28_vm0, %v227_v0  ;;  %173 = vset.pattern.permute.xlu1 %v228_v1  ;;  %v30_v2 = vld [vmem:[#allocation3] sm:$0x3]  ;;  %v37_v3 = vld [vmem:[%s290_s1] sm:$0x3] }
  0x14   :  { %32 = vrot.lane.b32.xlu0 %v30_v2, %s229_s21  ;;  %v230_v4 = vmov 6   ;;  %s231_s24 = smov 6   ;;  %vm35_vm1 = vcmask 42024   ;;  %vm42_vm2 = vcmask 50224   ;;  %v44_v8 = vld [vmem:[#allocation3] sm:$0x3] }
  0x15   :  { %175 = vset.pattern.permute.xlu0 %v230_v4  ;;  %vm58_vm3 = vcmask 1041408   ;;  %v52_v12 = vld [vmem:[%s290_s1] sm:$0x3]  ;;  %vm63_vm4 = vcmask 1024   ;;  %vm70_vm5 = vcmask 9224   ;;  %vm78_vm6 = vcmask 17424  }
  0x16   :  { %vm86_vm7 = vcmask 25624   ;;  %vm94_vm8 = vcmask 33824   ;;  %s232_s1 = smov 2   ;;  %s233_s26 = smov 127  }
  0x17   :  { %s234_s27 = smov 4   ;;  %s235_s28 = smov 124  }
  0x18   :  { %39 = vrot.lane.b32.xlu0 %v37_v3, %s231_s24  ;;  %s236_s29 = smov [#allocation6]  }
  0x19   :  { %s151_s30 = sshll.u32 %s236_s29, 4  ;;  %s152_s30 = int_to_ptr.vmem [resolvable:$true] %s151_s30 }
  0x1a   :  { %s200_s4 = scalar_lea.vmem %s152_s30, 128  ;;  %p205_p9 = scmp.lt.s32.totalorder %s152_s30, %s152_s30 }
  0x1b   :  { %p201_p8 = scmp.ne.s32.totalorder %s152_s30, %s200_s4  ;;  %p206_p10 = scmp.lt.s32.totalorder %s200_s4, %s200_s4 }
  0x1d   :  { %p207_p11 = por %p206_p10, %p205_p9 }
  0x1f   :  { %p208_p12 = pnand %p207_p11, %p201_p8 }
  0x86   :  { %v33_v5 = vpop.permute.xlu0 %32 }
  0x87   :  { %36 = vst.msk [vmem:[#allocation2] sm:$0x3] %vm35_vm1, %v33_v5 }
  0x8a   :  { %v40_v6 = vpop.permute.xlu0 %39 }
  0x8b   :  { %43 = vst.msk [vmem:[#allocation2] sm:$0x3] %vm42_vm2, %v40_v6 }
  0x92   :  { %v45_v7 = vld [vmem:[#allocation2] sm:$0x3] }
  0x93   :  { %48 = vperm.xlu1 %173, %v45_v7  }
  0x97   :  { %174 = vset.pattern.permute.xlu1 %v230_v4 }
  0x98   :  { %54 = vperm.xlu1 %174, %v45_v7  }
 0x112   :  { %v49_v9 = vpop.permute.xlu1 %48 }
 0x113   :  { %v51_v10 = vsub.f32 %v44_v8, %v49_v9 }
 0x115   :  { %v59_v11 = vsel %vm58_vm3, %v51_v10, 0.0  ;;  %v73_v13 = vmul.f32 %v51_v10, %v51_v10 }
 0x116   :  { %60 = vadd.xlane.f32.xlu0 %v59_v11 }
 0x117   :  { %v55_v14 = vpop.permute.xlu1 %54  ;;  %v74_v16 = vsel %vm58_vm3, %v73_v13, 0.0 }
 0x118   :  { %v57_v15 = vsub.f32 %v52_v12, %v55_v14 }
 0x11a   :  { %75 = vadd.xlane.f32.xlu0 %v74_v16  ;;  %v66_v17 = vsel %vm58_vm3, %v57_v15, 0.0  ;;  %v81_v18 = vmul.f32 %v57_v15, %v57_v15  ;;  %v89_v19 = vmul.f32 %v57_v15, %v51_v10 }
 0x11b   :  { %67 = vadd.xlane.f32.xlu1 %v66_v17 }
 0x11c   :  { %v82_v20 = vsel %vm58_vm3, %v81_v18, 0.0  ;;  %v90_v21 = vsel %vm58_vm3, %v89_v19, 0.0 }
 0x11e   :  { %83 = vadd.xlane.f32.xlu0 %v82_v20 }
 0x11f   :  { %91 = vadd.xlane.f32.xlu1 %v90_v21 }
 0x1a3   :  { %v61_v22 = vpop.xlane.xlu0 %60 }
 0x1a4   :  { %v62_v23 = vadd.f32 %v61_v22, %v45_v7 }
 0x1a6   :  { %64 = vst.msk [vmem:[#allocation2] sm:$0x3] %vm63_vm4, %v62_v23 }
 0x1a7   :  { %v76_v27 = vpop.xlane.xlu0 %75 }
 0x1a8   :  { %v68_v25 = vpop.xlane.xlu1 %67 }
 0x1ab   :  { %v84_v30 = vpop.xlane.xlu0 %83 }
 0x1ac   :  { %v92_v34 = vpop.xlane.xlu1 %91 }
 0x1ad   :  { %v65_v24 = vld [vmem:[#allocation2] sm:$0x3] }
 0x1ae   :  { %v69_v26 = vadd.f32 %v68_v25, %v65_v24 }
 0x1b0   :  { %71 = vst.msk [vmem:[#allocation2] sm:$0x3] %vm70_vm5, %v69_v26 }
 0x1b7   :  { %v72_v28 = vld [vmem:[#allocation2] sm:$0x3] }
 0x1b8   :  { %v77_v29 = vadd.f32 %v76_v27, %v72_v28 }
 0x1ba   :  { %79 = vst.msk [vmem:[#allocation2] sm:$0x3] %vm78_vm6, %v77_v29 }
 0x1c1   :  { %v80_v31 = vld [vmem:[#allocation2] sm:$0x3] }
 0x1c2   :  { %v85_v32 = vadd.f32 %v84_v30, %v80_v31 }
 0x1c4   :  { %87 = vst.msk [vmem:[#allocation2] sm:$0x3] %vm86_vm7, %v85_v32 }
 0x1cb   :  { %v88_v33 = vld [vmem:[#allocation2] sm:$0x3] }
 0x1cc   :  { %v93_v35 = vadd.f32 %v92_v34, %v88_v33 }
 0x1ce   :  { %95 = vst.msk [vmem:[#allocation2] sm:$0x3] %vm94_vm8, %v93_v35 }
 0x1d5   :  { %v99_v36 = vld [vmem:[#allocation2] sm:$0x3] }
 0x1d6   :  { %v111_v37 = vmul.f32 %v99_v36, %v99_v36  ;;  %v100_v38 = vmul.f32 128.0, %v99_v36 }
 0x1d8   :  { %113 = vrot.lane.b32.xlu0 %v111_v37, %s232_s1 }
 0x24a   :  { %v114_v39 = vpop.permute.xlu0 %113 }
 0x24b   :  { %v116_v40 = vsub.f32 %v100_v38, %v114_v39 }
 0x24d   :  { %118 = vrot.lane.b32.xlu1 %v116_v40, %s233_s26 }
 0x251   :  { %102 = vrot.lane.b32.xlu1 %v99_v36, %s233_s26 }
 0x2bf   :  { %v119_v41 = vpop.permute.xlu1 %118 }
 0x2c0   :  { %v121_v42 = vmul.f32 %v119_v41, %v116_v40 }
 0x2c2   :  { %176 = vrsqrt.f32 %v121_v42 }
 0x2c3   :  { %v103_v43 = vpop.permute.xlu1 %102 }
 0x2c4   :  { %v105_v44 = vmul.f32 %v103_v43, %v99_v36 }
 0x2c6   :  { %107 = vrot.lane.b32.xlu0 %v105_v44, %s234_s27 }
 0x2cc   :  { %v177_v45 = vpop.eup %176 }
 0x2cd   :  { %124 = vrot.lane.b32.xlu1 %v177_v45, %s232_s1 }
 0x338   :  { %v108_v46 = vpop.permute.xlu0 %107 }
 0x339   :  { %v110_v47 = vsub.f32 %v100_v38, %v108_v46 }
 0x33f   :  { %v125_v48 = vpop.permute.xlu1 %124 }
 0x340   :  { %v127_v49 = vmul.f32 %v125_v48, %v110_v47 }
 0x342   :  { %v128_v50 = vsub.f32 1.0, %v127_v49 }
 0x344   :  { %130 = vrot.lane.b32.xlu0 %v128_v50, %s235_s28 }
 0x3b6   :  { %v131_v51 = vpop.permute.xlu0 %130 }
 0x3b7   :  { %v133_v52 = vsel %vm63_vm4, %v131_v51, 0.0 }
 0x3b8   :  { %134 = vadd.xlane.f32.xlu1 %v133_v52 }
 0x445   :  { %v135_v53 = vpop.xlane.xlu1 %134 }
 0x446   :  { %v136_v54 = vrot.slane %v135_v53, 4 }
 0x448   :  { %v137_v55 = vadd.f32 %v136_v54, %v135_v53 }
 0x44a   :  { %v138_v56 = vrot.slane %v137_v55, 2 }
 0x44c   :  { %v139_v57 = vadd.f32 %v138_v56, %v137_v55 }
 0x44e   :  { %v140_v58 = vrot.slane %v139_v57, 1 }
 0x450   :  { %v141_v59 = vadd.f32 %v140_v58, %v139_v57 }
 0x452   :  { %160 = vpush %v141_v59 }
 0x483   :  { %s161_s3 = spop %160 }
 0x484   :  { %v143_v60 = vstv %s161_s3 }
 0x485   :  { %144 = vst [vmem:[#allocation6] sm:$0xff] %v143_v60 }
 0x486   :  { %211 = shalt.err (!%p208_p12)
}
 0x487   :  { %s212_s7 = scalar_lea.hbm %s291_s2, 128 }
 0x488   :  { %p213_p13 = scmp.ne.s32.totalorder %s291_s2, %s212_s7  ;;  %p216_p0 = scmp.lt.u32.totalorder %s212_s7, %s291_s2 }
 0x48a   :  { %p218_p1 = pnand %p216_p0, %p213_p13 }
 0x48c   :  { %221 = shalt.err (!%p218_p1)
}
 0x48d   :  { %154 = dma.vmem_to_hbm [thread:$0]  %s152_s30, 128, %s291_s2, [#allocation5]  }
 0x48e   :  { %224 = dma.done.wait [#allocation5], 128  }
 0x48f   :  { %225 = vsyncadd [#allocation5], 4294967168 }
 0x490   :  { %158 = vsyncpa [#allocation4], 1 }
 0x491   :  { %159 = vsyncpa [#allocation5], 1 }

</bundles_post_ra>
